<compile_context>
chip_gen: v7x
topology: tpu7x:2x2x1
jax: 0.10.0
libtpu: 0.0.40
codegen_flags: <defaults>
</compile_context>

<pallas_src>
import functools

import jax
import jax.numpy as jnp
from jax.experimental import pallas as pl
from jax.experimental.pallas import tpu as pltpu


# Below this batch size the op is launch-bound; plain XLA fuses it for free.
# (Production threshold per roofline analysis would be ~16K; kept low here so
#  the tiled Pallas path is easy to exercise in tests.)
_PALLAS_MIN_BATCH = 1024


def _round_up(n: int, m: int) -> int:
    return m * pl.cdiv(n, m)


def _linear_t_kernel(w_ref, b_ref, xT_ref, o_ref):
    # w_ref: (3,) f32 in SMEM; b_ref: (1,) f32 in SMEM
    # xT_ref: (3, TB) in VMEM (input dtype); o_ref: (1, TB) in VMEM
    x = xT_ref[...].astype(jnp.float32)          # widen once; f32 VPU compute
    w0 = w_ref[0]
    w1 = w_ref[1]
    w2 = w_ref[2]
    b = b_ref[0]
    # Three lane-dense VPU multiply-adds over full (1, TB) rows.
    y = x[0:1, :] * w0 + x[1:2, :] * w1 + x[2:3, :] * w2 + b
    o_ref[...] = y.astype(o_ref.dtype)           # unmasked, lane-dense store


def linear_pallas(x, weight, bias, *, block_b: int = 8192, force_pallas: bool = False):
    """y = x @ weight.T + bias  (PyTorch nn.Linear(3, 1) semantics).

    x:      (B, 3)
    weight: (1, 3)   -- PyTorch layout
    bias:   (1,)
    """
    B, in_f = x.shape
    assert weight.shape == (1, 3) and bias.shape == (1,) and in_f == 3, (
        "kernel is specialized to nn.Linear(3, 1)")
    out_f = weight.shape[0]

    # Tiny batches: let XLA fuse it — the custom-call boundary costs more than
    # the whole computation.
    if not force_pallas and B < _PALLAS_MIN_BATCH:
        return x @ weight.T + bias

    # Lane-dense tiling over the batch axis.
    tb = min(_round_up(block_b, 128), _round_up(B, 128))
    padded_b = _round_up(B, tb)
    grid = (padded_b // tb,)

    # Present x transposed (3, B) so B lives on the 128-lane axis; pad B.
    xT = x.T
    if padded_b != B:
        xT = jnp.pad(xT, ((0, 0), (0, padded_b - B)))

    # Params as scalars in SMEM; force f32 so VPU compute stays f32 (v5e-safe).
    w_flat = weight.astype(jnp.float32).reshape(3)
    b_flat = bias.astype(jnp.float32).reshape(1)

    itemsize = jnp.dtype(x.dtype).itemsize
    cost = pl.CostEstimate(
        flops=7 * padded_b,                       # 3 mul + 3 add + bias add per elem
        transcendentals=0,
        bytes_accessed=(3 * padded_b + padded_b) * itemsize,
    )

    out_t = pl.pallas_call(
        _linear_t_kernel,
        out_shape=jax.ShapeDtypeStruct((out_f, padded_b), x.dtype),
        grid=grid,
        in_specs=[
            pl.BlockSpec(memory_space=pltpu.MemorySpace.SMEM),   # weight (3,)
            pl.BlockSpec(memory_space=pltpu.MemorySpace.SMEM),   # bias (1,)
            pl.BlockSpec((3, tb), lambda i: (0, i)),             # xT tile (3, TB)
        ],
        out_specs=pl.BlockSpec((out_f, tb), lambda i: (0, i)),   # (1, TB) lane-dense
        compiler_params=pltpu.CompilerParams(
            dimension_semantics=("parallel",),                   # megacore on v7x
        ),
        cost_estimate=cost,
    )(w_flat, b_flat, xT)

    # Back to PyTorch orientation (B, 1); slice off padding.
    return out_t[:, :B].T


if __name__ == "__main__":
    key = jax.random.PRNGKey(0)
    kx, kw, kb, kx2 = jax.random.split(key, 4)

    B, IN, OUT = 8, 3, 1

    # Deterministic params (mimics PyTorch Linear's U(-1/sqrt(in), 1/sqrt(in)))
    bound = 1.0 / jnp.sqrt(jnp.float32(IN))
    weight = jax.random.uniform(kw, (OUT, IN), jnp.float32, -bound, bound)
    bias = jax.random.uniform(kb, (OUT,), jnp.float32, -bound, bound)

    # Small batch consistent with the module; force the Pallas path so the
    # kernel itself is exercised (normally this size would fall back to XLA).
    x = jax.random.normal(kx, (B, IN), jnp.float32)
    y = linear_pallas(x, weight, bias, force_pallas=True)
    jax.block_until_ready(y)
    y_ref = x @ weight.T + bias
    assert y.shape == (B, OUT)
    assert jnp.allclose(y, y_ref, atol=1e-5, rtol=1e-5)

    # Also exercise the tiled multi-step grid path (2 blocks of 1024 lanes).
    B2 = 2048
    x2 = jax.random.normal(kx2, (B2, IN), jnp.float32)
    y2 = linear_pallas(x2, weight, bias, block_b=1024)
    jax.block_until_ready(y2)
    y2_ref = x2 @ weight.T + bias
    assert y2.shape == (B2, OUT)
    assert jnp.allclose(y2, y2_ref, atol=1e-5, rtol=1e-5)

    print("KERNEL_OK")
</pallas_src>

<mosaic_0001>
module attributes {stable_mosaic.version = 11 : i64} {
  func.func @_linear_t_kernel(%arg0: i32, %arg1: memref<3xf32, #tpu.memory_space<smem>>, %arg2: memref<1xf32, #tpu.memory_space<smem>>, %arg3: memref<3x128xf32, #tpu.memory_space<vmem>>, %arg4: memref<1x128xf32, #tpu.memory_space<vmem>>) attributes {dimension_semantics = [#tpu.dimension_semantics<parallel>], iteration_bounds = array<i64: 1>, scalar_prefetch = 0 : i64, scratch_operands = 0 : i64, tpu.core_type = #tpu.core_type<tc>, window_params = [{transform_indices = @transform_0, window_bounds = array<i64: 3>}, {transform_indices = @transform_1, window_bounds = array<i64: 1>}, {transform_indices = @transform_2, window_bounds = array<i64: 3, 128>}, {transform_indices = @transform_3, window_bounds = array<i64: 1, 128>}]} {
    %c0 = arith.constant 0 : index
    %c0_0 = arith.constant 0 : index
    %0 = vector.load %arg3[%c0, %c0_0] : memref<3x128xf32, #tpu.memory_space<vmem>>, vector<3x128xf32>
    %c0_1 = arith.constant 0 : index
    %1 = memref.load %arg1[%c0_1] : memref<3xf32, #tpu.memory_space<smem>>
    %c1 = arith.constant 1 : index
    %2 = memref.load %arg1[%c1] : memref<3xf32, #tpu.memory_space<smem>>
    %c2 = arith.constant 2 : index
    %3 = memref.load %arg1[%c2] : memref<3xf32, #tpu.memory_space<smem>>
    %c0_2 = arith.constant 0 : index
    %4 = memref.load %arg2[%c0_2] : memref<1xf32, #tpu.memory_space<smem>>
    %5 = vector.extract_strided_slice %0 {offsets = [0, 0], sizes = [1, 128], strides = [1, 1]} : vector<3x128xf32> to vector<1x128xf32>
    %6 = vector.broadcast %1 : f32 to vector<1x128xf32>
    %7 = arith.mulf %5, %6 : vector<1x128xf32>
    %8 = vector.extract_strided_slice %0 {offsets = [1, 0], sizes = [1, 128], strides = [1, 1]} : vector<3x128xf32> to vector<1x128xf32>
    %9 = vector.broadcast %2 : f32 to vector<1x128xf32>
    %10 = arith.mulf %8, %9 : vector<1x128xf32>
    %11 = arith.addf %7, %10 : vector<1x128xf32>
    %12 = vector.extract_strided_slice %0 {offsets = [2, 0], sizes = [1, 128], strides = [1, 1]} : vector<3x128xf32> to vector<1x128xf32>
    %13 = vector.broadcast %3 : f32 to vector<1x128xf32>
    %14 = arith.mulf %12, %13 : vector<1x128xf32>
    %15 = arith.addf %11, %14 : vector<1x128xf32>
    %16 = vector.broadcast %4 : f32 to vector<1x128xf32>
    %17 = arith.addf %15, %16 : vector<1x128xf32>
    %c0_3 = arith.constant 0 : index
    %c0_4 = arith.constant 0 : index
    %18 = vector.load %arg4[%c0_3, %c0_4] : memref<1x128xf32, #tpu.memory_space<vmem>>, vector<1x128xf32>
    tpu.vector_store %arg4[%c0_3, %c0_4], %17 {strides = array<i32>} : memref<1x128xf32, #tpu.memory_space<vmem>>, vector<1x128xf32>,
    return
  }
  func.func @transform_0(%arg0: i32) -> i32 {
    %c0_i32 = arith.constant 0 : i32
    %c0_i32_0 = arith.constant 0 : i32
    return %c0_i32 : i32
  }
  func.func @transform_1(%arg0: i32) -> i32 {
    %c0_i32 = arith.constant 0 : i32
    %c0_i32_0 = arith.constant 0 : i32
    return %c0_i32 : i32
  }
  func.func @transform_2(%arg0: i32) -> (i32, i32) {
    %c0_i32 = arith.constant 0 : i32
    %c0_i32_0 = arith.constant 0 : i32
    return %c0_i32, %arg0 : i32, i32
  }
  func.func @transform_3(%arg0: i32) -> (i32, i32) {
    %c0_i32 = arith.constant 0 : i32
    %c0_i32_0 = arith.constant 0 : i32
    return %c0_i32, %arg0 : i32, i32
  }
}

</mosaic_0001>

<bundles_post_ra>
// kernel: tpu_custom_call.1
= control target key start
LH: loop header
LB: loop body
LE: loop exit
PB: predicated region body
PF: predicated region fallthrough
CT: control target
= control target key end

     0   :  { %9 = vsyncpa [#allocation5], 0  ;;  %s151_s0 = inlined_call_operand.vmem [shape: f32[3], index: 0, kind: input, shape index: {}]   ;;  %s152_s1 = inlined_call_operand.<no memory space> [shape: f32[1], index: 1, kind: input, shape index: {}]   ;;  %s153_s2 = inlined_call_operand.vmem [shape: f32[3,128], index: 2, kind: input, shape index: {}]   ;;  %s154_s3 = inlined_call_operand.hbm [shape: f32[1,128], index: 3, kind: output, shape index: {}]  }
   0x1   :  { %10 = vsyncpa [#allocation4], 0  ;;  %s17_s14 = sshll.u32 %s151_s0, 4  ;;  %s18_s14 = int_to_ptr.vmem [resolvable:$true] %s17_s14 }
   0x2   :  { %s70_s15 = scalar_lea.vmem %s18_s14, 16  ;;  %p75_p1 = scmp.lt.s32.totalorder %s18_s14, %s18_s14 }
   0x3   :  { %p71_p0 = scmp.ne.s32.totalorder %s18_s14, %s70_s15  ;;  %p76_p2 = scmp.lt.s32.totalorder %s70_s15, %s70_s15 }
   0x5   :  { %p77_p3 = por %p76_p2, %p75_p1 }
   0x7   :  { %p78_p4 = pnand %p77_p3, %p71_p0 }
   0x9   :  { %81 = shalt.err (!%p78_p4)
}
   0xa   :  { %s108_s16 = smov [#allocation3]  }
   0xb   :  { %20 = dma.vmem_to_smem %s18_s14, 16, %s108_s16, [#allocation5]  }
   0xc   :  { %104 = dma.done.wait [#allocation5], 16  }
   0xd   :  { %105 = vsyncadd [#allocation5], 4294967280 }
   0xe   :  { %28 = sfence }
   0xf   :  { %s30_s17 = sld [smem:[#allocation3]]  ;;  %s66_s18 = sld [smem:[#allocation3 + $0x1]]  ;;  %v29_v0 = vld [vmem:[%s153_s2] sm:$0x7]  ;;  %v48_v10 = vstv %s152_s1 }
  0x10   :  { %s67_s19 = sld [smem:[#allocation3 + $0x2]]  ;;  %s109_s23 = smov [#allocation6]  }
  0x11   :  { %s57_s24 = sshll.u32 %s109_s23, 4  ;;  %s58_s24 = int_to_ptr.vmem [resolvable:$true] %s57_s24 }
  0x12   :  { %s82_s2 = scalar_lea.vmem %s58_s24, 16  ;;  %s86_s25 = scalar_lea.vmem %s58_s24, 32 }
  0x13   :  { %p83_p5 = scmp.ne.s32.totalorder %s58_s24, %s82_s2  ;;  %p87_p6 = scmp.lt.s32.totalorder %s58_s24, %s58_s24 }
  0x14   :  { %p88_p7 = scmp.lt.s32.totalorder %s86_s25, %s82_s2 }
  0x15   :  { %v34_v1 = vstv %s30_s17  ;;  %v36_v2 = vstv %s66_s18 }
  0x16   :  { %v35_v3 = vmul.f32 %v34_v1, %v29_v0  ;;  %v37_v4 = vmul.f32 %v36_v2, %v29_v0  ;;  %v42_v5 = vstv %s67_s19  ;;  %p89_p8 = por %p88_p7, %p87_p6 }
  0x17   :  { %v43_v6 = vmul.f32 %v42_v5, %v29_v0 }
  0x18   :  { %v39_v7 = vrot.slane %v37_v4, 1  ;;  %p90_p9 = pnand %p89_p8, %p83_p5 }
  0x19   :  { %v45_v8 = vrot.slane %v43_v6, 2 }
  0x1a   :  { %v41_v9 = vadd.f32 %v39_v7, %v35_v3 }
  0x1c   :  { %v47_v11 = vadd.f32 %v45_v8, %v41_v9 }
  0x1e   :  { %v49_v12 = vadd.f32 %v48_v10, %v47_v11 }
  0x20   :  { %50 = vst [vmem:[#allocation6] sm:$0x1] %v49_v12 }
  0x21   :  { %93 = shalt.err (!%p90_p9)
}
  0x22   :  { %s94_s28 = scalar_lea.hbm %s154_s3, 16 }
  0x23   :  { %p95_p10 = scmp.ne.s32.totalorder %s154_s3, %s94_s28  ;;  %p98_p11 = scmp.lt.u32.totalorder %s94_s28, %s154_s3 }
  0x25   :  { %p100_p12 = pnand %p98_p11, %p95_p10 }
  0x27   :  { %103 = shalt.err (!%p100_p12)
}
  0x28   :  { %60 = dma.vmem_to_hbm [thread:$0]  %s58_s24, 16, %s154_s3, [#allocation4]  }
  0x29   :  { %106 = dma.done.wait [#allocation4], 16  }
  0x2a   :  { %107 = vsyncadd [#allocation4], 4294967280 }
  0x2b   :  { %64 = vsyncpa [#allocation4], 1 }
  0x2c   :  { %65 = vsyncpa [#allocation5], 1 }

</bundles_post_ra>
